<compile_context>
chip_gen: v6e
topology: v6e:2x2x1
jax: 0.10.0
libtpu: 0.0.40
codegen_flags: <defaults>
</compile_context>

<pallas_src>
import functools

import jax
import jax.numpy as jnp
from jax.experimental import pallas as pl
from jax.experimental.pallas import tpu as pltpu


OUT_FEATURES = 10        # real classifier width
OUT_PAD = 128            # lane-dense padded output width


def _round_up(n, m):
    return ((n + m - 1) // m) * m


def _mlp_kernel(x_ref, w1_ref, b1_ref, w2_ref, b2_ref, w3_ref, b3_ref, o_ref):
    # x block: (TM, 256) bf16 (streamed per batch tile, double-buffered by Pallas).
    x = x_ref[...]

    # hidden1: Linear(256 -> 128) + ReLU.  bf16 operands, f32 accumulation.
    h1 = jnp.dot(x, w1_ref[...], preferred_element_type=jnp.float32) + b1_ref[...]
    h1 = jnp.maximum(h1, 0.0).astype(w2_ref.dtype)

    # hidden2: Linear(128 -> 64) + ReLU.
    h2 = jnp.dot(h1, w2_ref[...], preferred_element_type=jnp.float32) + b2_ref[...]
    h2 = jnp.maximum(h2, 0.0).astype(w3_ref.dtype)

    # out: Linear(64 -> 128 padded), no activation.  Columns 10..127 are exact zeros
    # (zero-padded weights/bias); sliced/masked off by the consumer.
    y = jnp.dot(h2, w3_ref[...], preferred_element_type=jnp.float32) + b3_ref[...]
    o_ref[...] = y.astype(o_ref.dtype)


def prepare_params(params, compute_dtype=jnp.bfloat16):
    """One-time param prep: transpose to (in, out), cast weights to bf16, pad layer 3.

    Done once outside the hot path so no .T / pad / cast ops run per forward call.
    Biases stay f32 (added after the f32 accumulation).
    """
    w1 = jnp.asarray(params["hidden1_w"], jnp.float32).T.astype(compute_dtype)  # (256,128)
    b1 = jnp.asarray(params["hidden1_b"], jnp.float32).reshape(1, -1)           # (1,128) f32
    w2 = jnp.asarray(params["hidden2_w"], jnp.float32).T.astype(compute_dtype)  # (128,64)
    b2 = jnp.asarray(params["hidden2_b"], jnp.float32).reshape(1, -1)           # (1,64)  f32
    w3 = jnp.asarray(params["out_w"], jnp.float32).T                            # (64,10) f32
    b3 = jnp.asarray(params["out_b"], jnp.float32).reshape(1, -1)               # (1,10)  f32

    # Zero-pad the final layer to a lane-dense 128-wide output (unmasked stores).
    w3p = jnp.zeros((w3.shape[0], OUT_PAD), jnp.float32).at[:, :OUT_FEATURES].set(w3)
    b3p = jnp.zeros((1, OUT_PAD), jnp.float32).at[:, :OUT_FEATURES].set(b3)
    return (w1, b1, w2, b2, w3p.astype(compute_dtype), b3p)


def _pick_tile(batch, tile_m):
    """Batch tile: multiple of 16 rows (or the full batch) and >= 2 grid steps when
    the batch is big enough, so both v7x TensorCores get work via the 'parallel' axis."""
    tile_m = max(16, _round_up(tile_m, 16))
    if batch > tile_m:
        return tile_m
    if batch >= 64:
        # Split the batch into at least 2 grid steps (megacore), capped at tile_m.
        return min(tile_m, _round_up(pl.cdiv(batch, 2), 16))
    # Tiny batch: a single full-batch block (full-dim blocks are always legal).
    return batch


@functools.partial(jax.jit, static_argnames=("tile_m", "slice_output"))
def my_classifier_forward(x, prepared, *, tile_m=4096, slice_output=True):
    """x: (B, 256); prepared: output of prepare_params().

    Returns (B, 10) f32 logits (slice_output=True) or the padded (B, 128) f32 buffer
    (slice_output=False; columns 10..127 are exact zeros — slice/mask at point of use
    to avoid an extra HBM pass over the padded output).
    """
    B, D_in = x.shape
    w1, b1, w2, b2, w3p, b3p = prepared

    # Callers should pass bf16 x to avoid this extra cast pass over the input.
    if x.dtype != w1.dtype:
        x = x.astype(w1.dtype)

    tm = _pick_tile(B, tile_m)
    grid = (pl.cdiv(B, tm),)

    def resident(arr):
        # Full-array block, constant index_map: stays in VMEM across all grid steps.
        nd = arr.ndim
        return pl.BlockSpec(arr.shape, lambda *_: (0,) * nd)

    out_padded = pl.pallas_call(
        _mlp_kernel,
        out_shape=jax.ShapeDtypeStruct((B, OUT_PAD), jnp.float32),
        grid=grid,
        in_specs=[
            pl.BlockSpec((tm, D_in), lambda i: (i, 0)),   # x streamed per batch tile
            resident(w1), resident(b1),
            resident(w2), resident(b2),
            resident(w3p), resident(b3p),
        ],
        out_specs=pl.BlockSpec((tm, OUT_PAD), lambda i: (i, 0)),
        compiler_params=pltpu.CompilerParams(
            dimension_semantics=("parallel",),
            # Explicit scoped-VMEM limit so tm=4096 clears v5e's 16 MiB default;
            # well under physical VMEM on v5e/v6e (128 MiB) and v7x (64 MiB).
            vmem_limit_bytes=32 * 1024 * 1024,
        ),
    )(x, w1, b1, w2, b2, w3p, b3p)

    if slice_output:
        return out_padded[:, :OUT_FEATURES]
    return out_padded


def init_params(key):
    """Deterministic synthetic init matching nn.Linear shapes (out, in)."""
    ks = jax.random.split(key, 6)

    def uniform_linear(kw, kb, out_f, in_f):
        # PyTorch default init: U(-1/sqrt(in), 1/sqrt(in))
        bound = 1.0 / jnp.sqrt(jnp.float32(in_f))
        w = jax.random.uniform(kw, (out_f, in_f), jnp.float32, -bound, bound)
        b = jax.random.uniform(kb, (out_f,), jnp.float32, -bound, bound)
        return w, b

    w1, b1 = uniform_linear(ks[0], ks[1], 128, 256)
    w2, b2 = uniform_linear(ks[2], ks[3], 64, 128)
    w3, b3 = uniform_linear(ks[4], ks[5], 10, 64)
    return {
        "hidden1_w": w1, "hidden1_b": b1,
        "hidden2_w": w2, "hidden2_b": b2,
        "out_w": w3, "out_b": b3,
    }


def _reference_forward_f32(x, params):
    """Pure-f32 reference matching the PyTorch module exactly."""
    h1 = jax.nn.relu(x @ params["hidden1_w"].T + params["hidden1_b"])
    h2 = jax.nn.relu(h1 @ params["hidden2_w"].T + params["hidden2_b"])
    return h2 @ params["out_w"].T + params["out_b"]


def _reference_forward_mirror(x, prepared):
    """Reference that mirrors the kernel's bf16-operand / f32-accumulate arithmetic."""
    w1, b1, w2, b2, w3p, b3p = prepared
    f32 = lambda a: a.astype(jnp.float32)
    xq = x.astype(w1.dtype)
    h1 = jax.nn.relu(f32(xq) @ f32(w1) + b1).astype(w2.dtype)
    h2 = jax.nn.relu(f32(h1) @ f32(w2) + b2).astype(w3p.dtype)
    y = f32(h2) @ f32(w3p) + b3p
    return y[:, :OUT_FEATURES]


if __name__ == "__main__":
    key = jax.random.PRNGKey(0)
    k_x, k_p = jax.random.split(key)

    # Small test shapes consistent with the module (in_features=256).
    B = 8
    x_f32 = jax.random.normal(k_x, (B, 256), dtype=jnp.float32)
    params = init_params(k_p)
    prepared = prepare_params(params)

    x_bf16 = x_f32.astype(jnp.bfloat16)   # cast once at the boundary (bandwidth win)
    out = jax.block_until_ready(my_classifier_forward(x_bf16, prepared))
    assert out.shape == (B, OUT_FEATURES), out.shape
    assert out.dtype == jnp.float32, out.dtype

    # Tight check vs. an arithmetic mirror of the kernel (bf16 operands, f32 accum).
    ref_mirror = _reference_forward_mirror(x_f32, prepared)
    assert jnp.allclose(out, ref_mirror, atol=2e-3, rtol=2e-3), "mismatch vs bf16 mirror"

    # Loose check vs. the pure-f32 PyTorch-equivalent reference (bf16 quantization noise).
    ref_f32 = _reference_forward_f32(x_f32, params)
    assert jnp.allclose(out, ref_f32, atol=5e-2, rtol=5e-2), "mismatch vs f32 reference"

    # Exercise the multi-grid-step path: batch larger than one tile and not a multiple
    # of the tile size (partial last block), plus the non-sliced padded output path.
    B2 = 2048 + 24
    x2 = jax.random.normal(k_x, (B2, 256), dtype=jnp.float32).astype(jnp.bfloat16)
    out2 = jax.block_until_ready(my_classifier_forward(x2, prepared, tile_m=512))
    ref2 = _reference_forward_mirror(x2.astype(jnp.float32), prepared)
    assert out2.shape == (B2, OUT_FEATURES), out2.shape
    assert jnp.allclose(out2, ref2, atol=2e-3, rtol=2e-3), "mismatch vs mirror (tiled)"

    out2_pad = jax.block_until_ready(
        my_classifier_forward(x2, prepared, tile_m=512, slice_output=False))
    assert out2_pad.shape == (B2, OUT_PAD), out2_pad.shape
    assert jnp.allclose(out2_pad[:, :OUT_FEATURES], ref2, atol=2e-3, rtol=2e-3)
    assert jnp.all(out2_pad[:, OUT_FEATURES:] == 0.0), "padding columns must be exact zeros"

    print("KERNEL_OK")
</pallas_src>

<mosaic_0001>
module attributes {stable_mosaic.version = 11 : i64} {
  func.func @_mlp_kernel(%arg0: i32, %arg1: memref<8x256xbf16, #tpu.memory_space<vmem>>, %arg2: memref<256x128xbf16, #tpu.memory_space<vmem>>, %arg3: memref<1x128xf32, #tpu.memory_space<vmem>>, %arg4: memref<128x64xbf16, #tpu.memory_space<vmem>>, %arg5: memref<1x64xf32, #tpu.memory_space<vmem>>, %arg6: memref<64x128xbf16, #tpu.memory_space<vmem>>, %arg7: memref<1x128xf32, #tpu.memory_space<vmem>>, %arg8: memref<8x128xf32, #tpu.memory_space<vmem>>) attributes {dimension_semantics = [#tpu.dimension_semantics<parallel>], iteration_bounds = array<i64: 1>, scalar_prefetch = 0 : i64, scratch_operands = 0 : i64, tpu.core_type = #tpu.core_type<tc>, window_params = [{transform_indices = @transform_0, window_bounds = array<i64: 8, 256>}, {pipeline_mode = #tpu.pipeline_mode<synchronous>, transform_indices = @transform_1, window_bounds = array<i64: 256, 128>}, {pipeline_mode = #tpu.pipeline_mode<synchronous>, transform_indices = @transform_2, window_bounds = array<i64: 1, 128>}, {pipeline_mode = #tpu.pipeline_mode<synchronous>, transform_indices = @transform_3, window_bounds = array<i64: 128, 64>}, {pipeline_mode = #tpu.pipeline_mode<synchronous>, transform_indices = @transform_4, window_bounds = array<i64: 1, 64>}, {pipeline_mode = #tpu.pipeline_mode<synchronous>, transform_indices = @transform_5, window_bounds = array<i64: 64, 128>}, {pipeline_mode = #tpu.pipeline_mode<synchronous>, transform_indices = @transform_6, window_bounds = array<i64: 1, 128>}, {transform_indices = @transform_7, window_bounds = array<i64: 8, 128>}]} {
    %c0 = arith.constant 0 : index
    %c0_0 = arith.constant 0 : index
    %0 = vector.load %arg1[%c0, %c0_0] : memref<8x256xbf16, #tpu.memory_space<vmem>>, vector<8x256xbf16>
    %c0_1 = arith.constant 0 : index
    %c0_2 = arith.constant 0 : index
    %1 = vector.load %arg2[%c0_1, %c0_2] : memref<256x128xbf16, #tpu.memory_space<vmem>>, vector<256x128xbf16>
    %cst = arith.constant dense<0.000000e+00> : vector<8x128xf32>
    %2 = tpu.matmul %0, %1, %cst {dimension_numbers = #tpu.dot_dimension_numbers<[1], [0], [0], [1], [0, 0, 1, 1], [], []>} : vector<8x256xbf16>, vector<256x128xbf16>, vector<8x128xf32> -> vector<8x128xf32>
    %c0_3 = arith.constant 0 : index
    %c0_4 = arith.constant 0 : index
    %3 = vector.load %arg3[%c0_3, %c0_4] : memref<1x128xf32, #tpu.memory_space<vmem>>, vector<1x128xf32>
    %4 = vector.broadcast %3 : vector<1x128xf32> to vector<8x128xf32>
    %5 = arith.addf %2, %4 : vector<8x128xf32>
    %cst_5 = arith.constant 0.000000e+00 : f32
    %6 = vector.broadcast %cst_5 : f32 to vector<8x128xf32>
    %7 = arith.maximumf %5, %6 : vector<8x128xf32>
    %8 = arith.truncf %7 : vector<8x128xf32> to vector<8x128xbf16>
    %c0_6 = arith.constant 0 : index
    %c0_7 = arith.constant 0 : index
    %9 = vector.load %arg4[%c0_6, %c0_7] : memref<128x64xbf16, #tpu.memory_space<vmem>>, vector<128x64xbf16>
    %cst_8 = arith.constant dense<0.000000e+00> : vector<8x64xf32>
    %10 = tpu.matmul %8, %9, %cst_8 {dimension_numbers = #tpu.dot_dimension_numbers<[1], [0], [0], [1], [0, 0, 1, 1], [], []>} : vector<8x128xbf16>, vector<128x64xbf16>, vector<8x64xf32> -> vector<8x64xf32>
    %c0_9 = arith.constant 0 : index
    %c0_10 = arith.constant 0 : index
    %11 = vector.load %arg5[%c0_9, %c0_10] : memref<1x64xf32, #tpu.memory_space<vmem>>, vector<1x64xf32>
    %12 = vector.broadcast %11 : vector<1x64xf32> to vector<8x64xf32>
    %13 = arith.addf %10, %12 : vector<8x64xf32>
    %cst_11 = arith.constant 0.000000e+00 : f32
    %14 = vector.broadcast %cst_11 : f32 to vector<8x64xf32>
    %15 = arith.maximumf %13, %14 : vector<8x64xf32>
    %16 = arith.truncf %15 : vector<8x64xf32> to vector<8x64xbf16>
    %c0_12 = arith.constant 0 : index
    %c0_13 = arith.constant 0 : index
    %17 = vector.load %arg6[%c0_12, %c0_13] : memref<64x128xbf16, #tpu.memory_space<vmem>>, vector<64x128xbf16>
    %cst_14 = arith.constant dense<0.000000e+00> : vector<8x128xf32>
    %18 = tpu.matmul %16, %17, %cst_14 {dimension_numbers = #tpu.dot_dimension_numbers<[1], [0], [0], [1], [0, 0, 1, 1], [], []>} : vector<8x64xbf16>, vector<64x128xbf16>, vector<8x128xf32> -> vector<8x128xf32>
    %c0_15 = arith.constant 0 : index
    %c0_16 = arith.constant 0 : index
    %19 = vector.load %arg7[%c0_15, %c0_16] : memref<1x128xf32, #tpu.memory_space<vmem>>, vector<1x128xf32>
    %20 = vector.broadcast %19 : vector<1x128xf32> to vector<8x128xf32>
    %21 = arith.addf %18, %20 : vector<8x128xf32>
    %c0_17 = arith.constant 0 : index
    %c0_18 = arith.constant 0 : index
    %22 = vector.load %arg8[%c0_17, %c0_18] : memref<8x128xf32, #tpu.memory_space<vmem>>, vector<8x128xf32>
    tpu.vector_store %arg8[%c0_17, %c0_18], %21 {strides = array<i32>} : memref<8x128xf32, #tpu.memory_space<vmem>>, vector<8x128xf32>,
    return
  }
  func.func @transform_0(%arg0: i32) -> (i32, i32) {
    %c0_i32 = arith.constant 0 : i32
    %c0_i32_0 = arith.constant 0 : i32
    return %arg0, %c0_i32 : i32, i32
  }
  func.func @transform_1(%arg0: i32) -> (i32, i32) {
    %c0_i32 = arith.constant 0 : i32
    %c0_i32_0 = arith.constant 0 : i32
    %c0_i32_1 = arith.constant 0 : i32
    return %c0_i32, %c0_i32_0 : i32, i32
  }
  func.func @transform_2(%arg0: i32) -> (i32, i32) {
    %c0_i32 = arith.constant 0 : i32
    %c0_i32_0 = arith.constant 0 : i32
    %c0_i32_1 = arith.constant 0 : i32
    return %c0_i32, %c0_i32_0 : i32, i32
  }
  func.func @transform_3(%arg0: i32) -> (i32, i32) {
    %c0_i32 = arith.constant 0 : i32
    %c0_i32_0 = arith.constant 0 : i32
    %c0_i32_1 = arith.constant 0 : i32
    return %c0_i32, %c0_i32_0 : i32, i32
  }
  func.func @transform_4(%arg0: i32) -> (i32, i32) {
    %c0_i32 = arith.constant 0 : i32
    %c0_i32_0 = arith.constant 0 : i32
    %c0_i32_1 = arith.constant 0 : i32
    return %c0_i32, %c0_i32_0 : i32, i32
  }
  func.func @transform_5(%arg0: i32) -> (i32, i32) {
    %c0_i32 = arith.constant 0 : i32
    %c0_i32_0 = arith.constant 0 : i32
    %c0_i32_1 = arith.constant 0 : i32
    return %c0_i32, %c0_i32_0 : i32, i32
  }
  func.func @transform_6(%arg0: i32) -> (i32, i32) {
    %c0_i32 = arith.constant 0 : i32
    %c0_i32_0 = arith.constant 0 : i32
    %c0_i32_1 = arith.constant 0 : i32
    return %c0_i32, %c0_i32_0 : i32, i32
  }
  func.func @transform_7(%arg0: i32) -> (i32, i32) {
    %c0_i32 = arith.constant 0 : i32
    %c0_i32_0 = arith.constant 0 : i32
    return %arg0, %c0_i32 : i32, i32
  }
}

</mosaic_0001>

<bundles_post_ra>
// kernel: my_classifier_forward.1
= control target key start
LH: loop header
LB: loop body
LE: loop exit
PB: predicated region body
PF: predicated region fallthrough
CT: control target
= control target key end

     0   :  { %12 = vsyncpa [#allocation3], 0  ;;  %s735_s0 = inlined_call_operand.vmem [shape: bf16[8,256], index: 0, kind: input, shape index: {}]   ;;  %s736_s1 = inlined_call_operand.hbm [shape: bf16[256,128], index: 1, kind: input, shape index: {}]   ;;  %s737_s2 = inlined_call_operand.vmem [shape: f32[1,128], index: 2, kind: input, shape index: {}]   ;;  %s738_s3 = inlined_call_operand.vmem [shape: bf16[128,64], index: 3, kind: input, shape index: {}]   ;;  %s739_s4 = inlined_call_operand.vmem [shape: f32[1,64], index: 4, kind: input, shape index: {}]   ;;  %s740_s5 = inlined_call_operand.vmem [shape: bf16[64,128], index: 5, kind: input, shape index: {}]   ;;  %s741_s6 = inlined_call_operand.vmem [shape: f32[1,128], index: 6, kind: input, shape index: {}]   ;;  %s742_s7 = inlined_call_operand.hbm [shape: f32[8,128], index: 7, kind: output, shape index: {}]  }
   0x1   :  { %13 = vsyncpa [#allocation4], 0  ;;  %s621_s24 = smov [#allocation2]  }
   0x2   :  { %s21_s25 = sshll.u32 %s621_s24, 4  ;;  %s22_s25 = int_to_ptr.vmem [resolvable:$true] %s21_s25 }
   0x3   :  { %s585_s26 = scalar_lea.vmem %s22_s25, 2048  ;;  %p590_p1 = scmp.lt.s32.totalorder %s22_s25, %s22_s25 }
   0x4   :  { %p586_p0 = scmp.ne.s32.totalorder %s22_s25, %s585_s26  ;;  %p591_p2 = scmp.lt.s32.totalorder %s585_s26, %s585_s26 }
   0x6   :  { %p592_p3 = por %p591_p2, %p590_p1 }
   0x8   :  { %p593_p4 = pnand %p592_p3, %p586_p0 }
   0xa   :  { %596 = shalt.err (!%p593_p4)
}
   0xb   :  { %s622_s27 = smov 64   ;;  %s623_s28 = smov 4  }
   0xc   :  { %27 = dma.hbm_to_vmem [thread:$0]  %s736_s1, 2048, %s22_s25, [#allocation3], %s622_s27, %s622_s27, %s623_s28  }
   0xd   :  { %617 = dma.done.wait [#allocation3], 2048  }
   0xe   :  { %618 = vsyncadd [#allocation3], 4294965248  ;;  %v624_v0 = vmov 0.0   ;;  %v547_v1 = vld [vmem:[#allocation2 + $0x78] sm:$0xff]   ;;  %v549_v3 = vld [vmem:[#allocation2 + $0x70] sm:$0xff]   ;;  %vm625_vm0 = vmmov 0  }
   0xf   :  { %509 = vmatprep.subr.bf16.mxu1 %v624_v0  ;;  %v548_v2 = vld [vmem:[#allocation2 + $0x38] sm:$0xff]   ;;  %473 = vmatprep.subr.bf16.mxu0 %v547_v1  ;;  %v550_v4 = vld [vmem:[#allocation2 + $0x30] sm:$0xff]   ;;  %v551_v5 = vld [vmem:[#allocation2 + $0x68] sm:$0xff]   ;;  %vm379_vm1 = vcmask 523264   ;;  %s626_s12 = smov [#allocation5]  }
  0x10   :  { %474 = vmatpush3.bf16.msra.mxu0 %v548_v2  ;;  %v552_v6 = vld [vmem:[#allocation2 + $0x28] sm:$0xff]   ;;  %v553_v7 = vld [vmem:[#allocation2 + $0x60] sm:$0xff]   ;;  %v555_v9 = vld [vmem:[#allocation2 + $0x58] sm:$0xff]   ;;  %525 = vmatprep.mubr.msk.bf16.mxu1 %vm625_vm0, %v624_v0 }
  0x11   :  { %475 = vmatprep.subr.bf16.mxu0 %v549_v3  ;;  %v554_v8 = vld [vmem:[#allocation2 + $0x20] sm:$0xff]   ;;  %v556_v10 = vld [vmem:[#allocation2 + $0x18] sm:$0xff]   ;;  %v557_v11 = vld [vmem:[#allocation2 + $0x50] sm:$0xff]  }
  0x12   :  { %v42_v12 = vld [vmem:[%s735_s0] sm:$0xff]  ;;  %v565_v14 = vld [vmem:[%s738_s3 + $0x38] sm:$0xff]   ;;  %v558_v15 = vld [vmem:[#allocation2 + $0x10] sm:$0xff]  }
  0x13   :  { %v441_v13 = vcombine.high %v42_v12, %v42_v12  ;;  %v559_v16 = vld [vmem:[#allocation2 + $0x48] sm:$0xff]   ;;  %510 = vmatpush3.bf16.msra.mxu1 %v565_v14  ;;  %v566_v17 = vld [vmem:[%s738_s3 + $0x30] sm:$0xff]   ;;  %v561_v19 = vld [vmem:[#allocation2 + $0x40] sm:$0xff]   ;;  %v440_v23 = vcombine.low %v42_v12, %v42_v12 }
  0x14   :  { %476 = vmatpush3.bf16.msra.mxu0 %v550_v4  ;;  %v560_v18 = vld [vmem:[#allocation2 + $0x8] sm:$0xff]   ;;  %511 = vmatprep.subr.bf16.mxu1 %v624_v0  ;;  %v562_v21 = vld [vmem:[#allocation2] sm:$0xff]   ;;  %v569_v24 = vld [vmem:[%s738_s3 + $0x18] sm:$0xff]  }
  0x15   :  { %477 = vmatprep.subr.bf16.mxu0 %v551_v5  ;;  %217 = vmatprep.mubr.bf16.mxu0 %v441_v13  ;;  %v567_v20 = vld [vmem:[%s738_s3 + $0x28] sm:$0xff]   ;;  %v568_v22 = vld [vmem:[%s738_s3 + $0x20] sm:$0xff]   ;;  %v570_v25 = vld [vmem:[%s738_s3 + $0x10] sm:$0xff]  }
  0x16   :  { %v571_v26 = vld [vmem:[%s738_s3 + $0x8] sm:$0xff]   ;;  %v572_v27 = vld [vmem:[%s738_s3] sm:$0xff]   ;;  %v573_v28 = vld [vmem:[%s740_s5 + $0x18] sm:$0xff]  }
  0x17   :  { %512 = vmatpush3.bf16.msra.mxu1 %v566_v17  ;;  %v574_v29 = vld [vmem:[%s740_s5 + $0x10] sm:$0xff]   ;;  %v439_v31 = vld [vmem:[%s737_s2] ss:$0 sm:$0xff]  ;;  %v575_v39 = vld [vmem:[%s740_s5 + $0x8] sm:$0xff]  }
  0x18   :  { %478 = vmatpush3.bf16.msra.mxu0 %v552_v6  ;;  %513 = vmatprep.subr.bf16.mxu1 %v624_v0  ;;  %v576_v40 = vld [vmem:[%s740_s5] sm:$0xff]   ;;  %s430_s5 = sshll.u32 %s626_s12, 4  ;;  %s431_s5 = int_to_ptr.vmem [resolvable:$true] %s430_s5 }
  0x19   :  { %479 = vmatprep.subr.bf16.mxu0 %v553_v7  ;;  %v458_v41 = vld [vmem:[%s739_s4] ss:$0 sm:$0xff]  ;;  %s597_s4 = scalar_lea.vmem %s431_s5, 128  ;;  %p602_p6 = scmp.lt.s32.totalorder %s431_s5, %s431_s5 }
  0x1a   :  { %v467_v49 = vld [vmem:[%s741_s6] ss:$0 sm:$0xff]  ;;  %p598_p5 = scmp.ne.s32.totalorder %s431_s5, %s597_s4  ;;  %p603_p7 = scmp.lt.s32.totalorder %s597_s4, %s597_s4 }
  0x1b   :  { %514 = vmatpush3.bf16.msra.mxu1 %v567_v20 }
  0x1c   :  { %480 = vmatpush3.bf16.msra.mxu0 %v554_v8  ;;  %515 = vmatprep.subr.bf16.mxu1 %v624_v0  ;;  %p604_p8 = por %p603_p7, %p602_p6 }
  0x1d   :  { %481 = vmatprep.subr.bf16.mxu0 %v555_v9 }
  0x1e   :  { %p605_p9 = pnand %p604_p8, %p598_p5 }
  0x1f   :  { %516 = vmatpush3.bf16.msra.mxu1 %v568_v22 }
  0x20   :  { %482 = vmatpush3.bf16.msra.mxu0 %v556_v10  ;;  %517 = vmatprep.subr.bf16.mxu1 %v624_v0 }
  0x21   :  { %483 = vmatprep.subr.bf16.mxu0 %v557_v11 }
  0x23   :  { %518 = vmatpush3.bf16.msra.mxu1 %v569_v24 }
  0x24   :  { %484 = vmatpush3.bf16.msra.mxu0 %v558_v15  ;;  %519 = vmatprep.subr.bf16.mxu1 %v624_v0 }
  0x25   :  { %485 = vmatprep.subr.bf16.mxu0 %v559_v16 }
  0x27   :  { %520 = vmatpush3.bf16.msra.mxu1 %v570_v25 }
  0x28   :  { %486 = vmatpush3.bf16.msra.mxu0 %v560_v18  ;;  %521 = vmatprep.subr.bf16.mxu1 %v624_v0 }
  0x29   :  { %487 = vmatprep.subr.bf16.mxu0 %v561_v19 }
  0x2b   :  { %522 = vmatpush3.bf16.msra.mxu1 %v571_v26 }
  0x2c   :  { %488 = vmatpush3.bf16.msra.mxu0 %v562_v21  ;;  %523 = vmatprep.subr.bf16.mxu1 %v624_v0 }
  0x2d   :  { %529 = vmatprep.subr.bf16.mxu0 %v624_v0 }
  0x2f   :  { %218 = vmatmul.mubr.bf16.vlgmr.msra.gmra.mxu0 %v440_v23  ;;  %524 = vmatpush3.bf16.msra.mxu1 %v572_v27 }
  0x30   :  { %537 = vmatprep.mubr.msk.bf16.mxu0 %vm625_vm0, %v624_v0  ;;  %530 = vmatpush3.bf16.msra.mxu0 %v573_v28 }
  0x31   :  { %531 = vmatprep.subr.bf16.mxu0 %v624_v0 }
  0x34   :  { %532 = vmatpush3.bf16.msra.mxu0 %v574_v29 }
  0x35   :  { %533 = vmatprep.subr.bf16.mxu0 %v624_v0 }
  0x38   :  { %534 = vmatpush3.bf16.msra.mxu0 %v575_v39 }
  0x39   :  { %535 = vmatprep.subr.bf16.mxu0 %v624_v0 }
  0x3c   :  { %536 = vmatpush3.bf16.msra.mxu0 %v576_v40 }
  0xef   :  { %v489_v30 = vpop.f32.mrf.mxu0 }
  0xf1   :  { %v490_v32 = vpop.f32.mrf.mxu0 }
  0xf2   :  { %v491_v33 = vadd.f32 %v490_v32, %v489_v30 }
  0xf3   :  { %v492_v34 = vpop.f32.mrf.mxu0 }
  0xf4   :  { %v220_v35 = vadd.f32 %v491_v33, %v439_v31 }
  0xf5   :  { %v493_v36 = vpop.f32.mrf.mxu0 }
  0xf6   :  { %v225_v37 = vmax.f32 %v220_v35, 0.0 }
  0xf8   :  { %v226_v38 = vpack.c.bf16 %v225_v37, %v225_v37 }
  0xfa   :  { %526 = vmatmul.mubr.bf16.vlgmr.msra.gmra.mxu1 %v226_v38 }
 0x1ba   :  { %v332_v42 = vpop.f32.mrf.mxu1 }
 0x1bb   :  { %v333_v43 = vadd.f32 %v458_v41, %v332_v42 }
 0x1bc   :  { %v527_v44 = vpop.f32.mrf.mxu1 }
 0x1bd   :  { %v338_v45 = vmax.f32 %v333_v43, 0.0 }
 0x1be   :  { %v335_v46 = vpop.f32.mrf.mxu1 }
 0x1bf   :  { %v339_v47 = vpack.c.bf16 %v338_v45, %v338_v45 }
 0x1c0   :  { %v528_v48 = vpop.f32.mrf.mxu1 }
 0x1c1   :  { %538 = vmatmul.mubr.msk.bf16.vlgmr.msra.gmra.mxu0 %vm379_vm1, %v339_v47 }
 0x281   :  { %v417_v50 = vpop.f32.mrf.mxu0 }
 0x282   :  { %v418_v51 = vadd.f32 %v467_v49, %v417_v50 }
 0x283   :  { %v539_v52 = vpop.f32.mrf.mxu0 }
 0x284   :  { %423 = vst [vmem:[#allocation5] sm:$0xff] %v418_v51 }
 0x285   :  { %v420_v53 = vpop.f32.mrf.mxu0 }
 0x286   :  { %608 = shalt.err (!%p605_p9)
}
 0x287   :  { %433 = dma.vmem_to_hbm [thread:$0]  %s431_s5, 128, %s742_s7, [#allocation4]   ;;  %v540_v54 = vpop.f32.mrf.mxu0 }
 0x288   :  { %619 = dma.done.wait [#allocation4], 128  }
 0x289   :  { %620 = vsyncadd [#allocation4], 4294967168 }
 0x28a   :  { %437 = vsyncpa [#allocation3], 1 }
 0x28b   :  { %438 = vsyncpa [#allocation4], 1 }

</bundles_post_ra>
